<compile_context>
chip_gen: v6e
topology: v6e:2x2x1
jax: 0.10.0
libtpu: 0.0.40
codegen_flags: <defaults>
</compile_context>

<pallas_src>
import math

import jax
import jax.numpy as jnp
from jax import lax
from jax.experimental import pallas as pl
from jax.experimental.pallas import tpu as pltpu


def _round_up(x: int, m: int) -> int:
    return (x + m - 1) // m * m


def _default_block_q() -> int:
    """Generation-aware default q tile: 512 on v6e/v7x, 256 on v5e."""
    try:
        kind = jax.devices()[0].device_kind.lower()
    except Exception:
        return 512
    if "v5 lite" in kind or "v5e" in kind or "v5lite" in kind:
        return 256
    return 512


def _flash_kernel_factory(scale: float, valid_len: int, block_kv: int, needs_mask: bool):
    """Online-softmax flash attention over tiles.

    Tile shapes seen by the kernel (batch dim of the pallas grid squeezed away):
      q_ref : [block_h, block_q,  D]
      k_ref : [block_h, block_kv, D]
      v_ref : [block_h, block_kv, D]
      o_ref : [block_h, block_q,  D]
    Scratch (persistent across the kv grid axis):
      qs_sc : [block_h, block_q, D]  pre-scaled q (input dtype), filled at ki==0
      m_sc  : [block_h, block_q, 1]  f32 running max
      l_sc  : [block_h, block_q, 1]  f32 running denominator
      acc_sc: [block_h, block_q, D]  f32 running numerator
    """

    def kernel(q_ref, k_ref, v_ref, o_ref, qs_sc, m_sc, l_sc, acc_sc):
        ki = pl.program_id(3)  # kv-tile axis (innermost, "arbitrary")

        @pl.when(ki == 0)
        def _init():
            # Fold the softmax scale into q once per q tile (O(bh*bq*D)) instead of
            # multiplying the O(bh*bq*bkv) score tile on every kv step.  The product
            # is formed in f32 and rounded to the input dtype exactly once.
            qs_sc[...] = (q_ref[...].astype(jnp.float32) * scale).astype(qs_sc.dtype)
            m_sc[...] = jnp.full_like(m_sc, -jnp.inf)
            l_sc[...] = jnp.zeros_like(l_sc)
            acc_sc[...] = jnp.zeros_like(acc_sc)

        k = k_ref[...]
        v = v_ref[...]

        # s[h, i, j] = sum_d q_scaled[h, i, d] * k[h, j, d]  (no explicit k.T,
        # bf16 operands into the MXU, f32 accumulation; scale already folded in).
        s = lax.dot_general(
            qs_sc[...], k,
            dimension_numbers=(((2,), (2,)), ((0,), (0,))),
            preferred_element_type=jnp.float32,
        )  # [block_h, block_q, block_kv] f32

        if needs_mask:
            # Only boundary / fully-padded tail kv tiles pay for the mask; interior
            # tiles skip the iota + compare + select entirely (scalar-gated).
            def _mask_tail(sv):
                kv_pos = ki * block_kv + lax.broadcasted_iota(
                    jnp.int32, (1, 1, block_kv), 2
                )
                return jnp.where(kv_pos < valid_len, sv, -1e30)

            s = lax.cond((ki + 1) * block_kv > valid_len, _mask_tail, lambda sv: sv, s)

        m_prev = m_sc[...]
        m_new = jnp.maximum(m_prev, jnp.max(s, axis=-1, keepdims=True))
        alpha = jnp.exp(m_prev - m_new)           # rescale factor for old partials
        p = jnp.exp(s - m_new)                    # f32 probabilities (unnormalized)

        l_sc[...] = alpha * l_sc[...] + jnp.sum(p, axis=-1, keepdims=True)

        # PV matmul on the bf16 MXU path (p cast to value dtype), f32 accumulation.
        pv = lax.dot_general(
            p.astype(v_ref.dtype), v,
            dimension_numbers=(((2,), (1,)), ((0,), (0,))),
            preferred_element_type=jnp.float32,
        )  # [block_h, block_q, D]
        acc_sc[...] = alpha * acc_sc[...] + pv
        m_sc[...] = m_new

        @pl.when(ki == pl.num_programs(3) - 1)
        def _finalize():
            inv_l = pl.reciprocal(l_sc[...], approx=True)   # EUP slot
            o_ref[...] = (acc_sc[...] * inv_l).astype(o_ref.dtype)

    return kernel


def _pallas_flash_attention(q_bhsd, k_bhsd, v_bhsd, scale, valid_len,
                            block_q, block_kv, block_h):
    """q/k/v: [B, H, S_pad, D] -> output [B, H, S_pad, D]."""
    B, H, S_pad, D = q_bhsd.shape
    assert H % block_h == 0 and S_pad % block_q == 0 and S_pad % block_kv == 0

    n_hb = H // block_h
    n_qb = S_pad // block_q
    n_kvb = S_pad // block_kv
    needs_mask = S_pad != valid_len

    q_spec = pl.BlockSpec((None, block_h, block_q, D),
                          lambda b, hi, qi, ki: (b, hi, qi, 0))
    kv_spec = pl.BlockSpec((None, block_h, block_kv, D),
                           lambda b, hi, qi, ki: (b, hi, ki, 0))
    out_spec = pl.BlockSpec((None, block_h, block_q, D),
                            lambda b, hi, qi, ki: (b, hi, qi, 0))

    kernel = _flash_kernel_factory(scale, valid_len, block_kv, needs_mask)

    return pl.pallas_call(
        kernel,
        out_shape=jax.ShapeDtypeStruct((B, H, S_pad, D), q_bhsd.dtype),
        grid_spec=pltpu.PrefetchScalarGridSpec(
            num_scalar_prefetch=0,
            grid=(B, n_hb, n_qb, n_kvb),   # kv (reduction) axis last
            in_specs=[q_spec, kv_spec, kv_spec],
            out_specs=out_spec,
            scratch_shapes=[
                pltpu.VMEM((block_h, block_q, D), q_bhsd.dtype),  # pre-scaled q
                pltpu.VMEM((block_h, block_q, 1), jnp.float32),   # running max
                pltpu.VMEM((block_h, block_q, 1), jnp.float32),   # running denom
                pltpu.VMEM((block_h, block_q, D), jnp.float32),   # accumulator
            ],
        ),
        compiler_params=pltpu.CompilerParams(
            dimension_semantics=("parallel", "parallel", "parallel", "arbitrary"),
            # Explicit scoped-VMEM limit: the 512x512 tiles (~11-12 MiB working set,
            # double-buffered) are borderline against v5e's 16 MiB default; 48 MiB is
            # comfortably below every generation's physical VMEM (64 MiB on v7x).
            vmem_limit_bytes=48 * 1024 * 1024,
        ),
    )(q_bhsd, k_bhsd, v_bhsd)


def distributed_attention_forward(
    q, k, v,
    replicated_q=None, replicated_k=None, replicated_v=None,
    softmax_scale=None,
    block_q: int | None = None, block_kv: int | None = None,
    block_h: int | None = None,
):
    """Single-rank (world_size=1) DistributedAttention.forward.

    q, k, v:            [B, S, H, D]
    replicated_q/k/v:   [B, S_rep, H, D] or None
    Returns (output [B, S, H, D], replicated_output [B, S_rep, H, D] or None).
    """
    assert q.ndim == 4 and k.ndim == 4 and v.ndim == 4, "Expected 4D tensors"
    B, S, H, D = q.shape
    scale = float(D ** -0.5) if softmax_scale is None else float(softmax_scale)

    if block_q is None:
        block_q = _default_block_q()   # 512 on v6e/v7x, 256 on v5e
    if block_kv is None:
        block_kv = 512

    S_rep = 0
    if replicated_q is not None:
        assert replicated_k is not None and replicated_v is not None
        S_rep = replicated_q.shape[1]
    S_total = S + S_rep

    # ---- tile sizing (clamped for small sequences, 8-aligned seq tiles) ------------
    bq = _round_up(min(block_q, _round_up(S_total, 8)), 8)
    bkv = _round_up(min(block_kv, _round_up(S_total, 8)), 8)
    S_pad = _round_up(S_total, math.lcm(bq, bkv))
    pad = S_pad - S_total

    if block_h is None:
        block_h = next(c for c in (8, 4, 2, 1) if H % c == 0)
    # v7x has 2 TensorCores: keep >= ~8 parallel grid steps (B x H/bh x S/bq) so
    # dimension_semantics=("parallel",...) can still shard across both cores.
    while (block_h > 1 and H % (block_h // 2) == 0
           and B * (H // block_h) * max(1, S_pad // bq) < 8):
        block_h //= 2
    assert H % block_h == 0

    # ---- concat main + replicated (+ zero padding) and transpose to [B,H,S,D] ------
    # world_size = 1: the all_to_all_4D is identity and the replicated-head slice
    # [rank*hpr:(rank+1)*hpr] selects all heads.  Single jnp expression chain so XLA
    # fuses concat + pad + transpose into one HBM copy.
    def _prep(x, r):
        parts = [x]
        if r is not None:
            parts.append(r)
        if pad > 0:
            parts.append(jnp.zeros((B, pad, H, D), x.dtype))
        cat = jnp.concatenate(parts, axis=1) if len(parts) > 1 else x
        return jnp.transpose(cat, (0, 2, 1, 3))          # [B, H, S_pad, D]

    qh = _prep(q, replicated_q)
    kh = _prep(k, replicated_k)
    vh = _prep(v, replicated_v)

    oh = _pallas_flash_attention(qh, kh, vh, scale, S_total, bq, bkv, block_h)

    # back to [B, S_total, H, D] (slice off the zero padding)
    # TODO(synk): store [B,S,H,D] directly from the kernel to drop this layout pass.
    out_full = jnp.transpose(oh, (0, 2, 1, 3))[:, :S_total]

    replicated_output = None
    if replicated_q is not None:
        replicated_output = out_full[:, S:]
        out = out_full[:, :S]
        # sequence_model_parallel_all_gather(dim=2) is identity at world_size=1
    else:
        out = out_full
    # final all_to_all_4D(scatter=1, gather=2) is identity at world_size=1
    # TODO(synk): world_size > 1 would need a ring of pltpu.make_async_remote_copy
    # transfers for the all_to_all / all_gather; out of scope for the single-rank path.
    return out, replicated_output


def _reference_attention(q, k, v, rq, rk, rv, scale):
    """Pure-JAX f32 reference of the same forward."""
    qf = q if rq is None else jnp.concatenate([q, rq], axis=1)
    kf = k if rk is None else jnp.concatenate([k, rk], axis=1)
    vf = v if rv is None else jnp.concatenate([v, rv], axis=1)
    qf, kf, vf = (t.astype(jnp.float32) for t in (qf, kf, vf))
    s = jnp.einsum("bqhd,bkhd->bhqk", qf, kf) * scale
    p = jax.nn.softmax(s, axis=-1)
    o = jnp.einsum("bhqk,bkhd->bqhd", p, vf)
    S = q.shape[1]
    return (o[:, :S], o[:, S:] if rq is not None else None)


if __name__ == "__main__":
    # Small deterministic shapes: batch=2, seq=16, replicated seq=8, heads=4, head_dim=64
    B, S, S_REP, H, D = 2, 16, 8, 4, 64
    dtype = jnp.bfloat16

    key = jax.random.PRNGKey(0)
    ks = jax.random.split(key, 6)
    q = jax.random.normal(ks[0], (B, S, H, D), dtype=dtype)
    k = jax.random.normal(ks[1], (B, S, H, D), dtype=dtype)
    v = jax.random.normal(ks[2], (B, S, H, D), dtype=dtype)
    rq = jax.random.normal(ks[3], (B, S_REP, H, D), dtype=dtype)
    rk = jax.random.normal(ks[4], (B, S_REP, H, D), dtype=dtype)
    rv = jax.random.normal(ks[5], (B, S_REP, H, D), dtype=dtype)

    # Small tiles so the test exercises multiple q / kv tiles, the online-softmax
    # carry across kv steps, and the lax.cond-gated padded-kv masking path
    # (S_total=24 -> S_pad=32: kv tile 0 unmasked, kv tile 1 masked).
    out, rep_out = distributed_attention_forward(
        q, k, v, rq, rk, rv, block_q=8, block_kv=16)
    out = jax.block_until_ready(out)
    rep_out = jax.block_until_ready(rep_out)

    assert out.shape == (B, S, H, D) and out.dtype == dtype
    assert rep_out.shape == (B, S_REP, H, D) and rep_out.dtype == dtype

    ref_out, ref_rep = _reference_attention(q, k, v, rq, rk, rv, D ** -0.5)
    err_main = float(jnp.max(jnp.abs(out.astype(jnp.float32) - ref_out)))
    err_rep = float(jnp.max(jnp.abs(rep_out.astype(jnp.float32) - ref_rep)))
    assert err_main < 7.5e-2, err_main
    assert err_rep < 7.5e-2, err_rep

    # Also exercise the no-replicated / no-padding path with default (clamped) tiles
    # and the block_h reduction heuristic.
    out2, rep2 = distributed_attention_forward(q, k, v)
    out2 = jax.block_until_ready(out2)
    assert rep2 is None and out2.shape == (B, S, H, D) and out2.dtype == dtype
    ref2, _ = _reference_attention(q, k, v, None, None, None, D ** -0.5)
    err2 = float(jnp.max(jnp.abs(out2.astype(jnp.float32) - ref2)))
    assert err2 < 7.5e-2, err2

    print("KERNEL_OK")
</pallas_src>

<mosaic_0001>
module attributes {stable_mosaic.version = 11 : i64} {
  func.func @kernel(%arg0: i32, %arg1: i32, %arg2: i32, %arg3: i32, %arg4: memref<1x4x8x64xbf16, #tpu.memory_space<vmem>>, %arg5: memref<1x4x16x64xbf16, #tpu.memory_space<vmem>>, %arg6: memref<1x4x16x64xbf16, #tpu.memory_space<vmem>>, %arg7: memref<1x4x8x64xbf16, #tpu.memory_space<vmem>>, %arg8: memref<4x8x64xbf16, #tpu.memory_space<vmem>>, %arg9: memref<4x8x1xf32, #tpu.memory_space<vmem>>, %arg10: memref<4x8x1xf32, #tpu.memory_space<vmem>>, %arg11: memref<4x8x64xf32, #tpu.memory_space<vmem>>) attributes {dimension_semantics = [#tpu.dimension_semantics<parallel>, #tpu.dimension_semantics<parallel>, #tpu.dimension_semantics<parallel>, #tpu.dimension_semantics<arbitrary>], iteration_bounds = array<i64: 2, 1, 4, 2>, scalar_prefetch = 0 : i64, scratch_operands = 4 : i64, tpu.core_type = #tpu.core_type<tc>, window_params = [{transform_indices = @transform_0, window_bounds = array<i64: 1, 4, 8, 64>}, {transform_indices = @transform_1, window_bounds = array<i64: 1, 4, 16, 64>}, {transform_indices = @transform_2, window_bounds = array<i64: 1, 4, 16, 64>}, {transform_indices = @transform_3, window_bounds = array<i64: 1, 4, 8, 64>}]} {
    %c0_i32 = arith.constant 0 : i32
    %0 = arith.cmpi eq, %arg3, %c0_i32 : i32
    %1 = arith.extui %0 : i1 to i32
    %c0_i32_0 = arith.constant 0 : i32
    %2 = arith.cmpi ne, %1, %c0_i32_0 : i32
    scf.if %2 {
      %c0_35 = arith.constant 0 : index
      %c0_36 = arith.constant 0 : index
      %c0_37 = arith.constant 0 : index
      %c0_38 = arith.constant 0 : index
      %41 = vector.load %arg4[%c0_35, %c0_36, %c0_37, %c0_38] : memref<1x4x8x64xbf16, #tpu.memory_space<vmem>>, vector<1x4x8x64xbf16>
      %42 = vector.shape_cast %41 : vector<1x4x8x64xbf16> to vector<4x8x64xbf16>
      %43 = arith.extf %42 : vector<4x8x64xbf16> to vector<4x8x64xf32>
      %cst_39 = arith.constant 1.250000e-01 : f32
      %44 = vector.broadcast %cst_39 : f32 to vector<4x8x64xf32>
      %45 = arith.mulf %43, %44 : vector<4x8x64xf32>
      %46 = arith.truncf %45 : vector<4x8x64xf32> to vector<4x8x64xbf16>
      %c0_40 = arith.constant 0 : index
      %c0_41 = arith.constant 0 : index
      %c0_42 = arith.constant 0 : index
      %47 = vector.load %arg8[%c0_40, %c0_41, %c0_42] : memref<4x8x64xbf16, #tpu.memory_space<vmem>>, vector<4x8x64xbf16>
      tpu.vector_store %arg8[%c0_40, %c0_41, %c0_42], %46 {strides = array<i32>} : memref<4x8x64xbf16, #tpu.memory_space<vmem>>, vector<4x8x64xbf16>,
      %cst_43 = arith.constant 0xFF800000 : f32
      %48 = vector.broadcast %cst_43 : f32 to vector<4x8x1xf32>
      %c0_44 = arith.constant 0 : index
      %c0_45 = arith.constant 0 : index
      %c0_46 = arith.constant 0 : index
      %49 = vector.load %arg9[%c0_44, %c0_45, %c0_46] : memref<4x8x1xf32, #tpu.memory_space<vmem>>, vector<4x8x1xf32>
      tpu.vector_store %arg9[%c0_44, %c0_45, %c0_46], %48 {strides = array<i32>} : memref<4x8x1xf32, #tpu.memory_space<vmem>>, vector<4x8x1xf32>,
      %cst_47 = arith.constant 0.000000e+00 : f32
      %50 = vector.broadcast %cst_47 : f32 to vector<4x8x1xf32>
      %c0_48 = arith.constant 0 : index
      %c0_49 = arith.constant 0 : index
      %c0_50 = arith.constant 0 : index
      %51 = vector.load %arg10[%c0_48, %c0_49, %c0_50] : memref<4x8x1xf32, #tpu.memory_space<vmem>>, vector<4x8x1xf32>
      tpu.vector_store %arg10[%c0_48, %c0_49, %c0_50], %50 {strides = array<i32>} : memref<4x8x1xf32, #tpu.memory_space<vmem>>, vector<4x8x1xf32>,
      %cst_51 = arith.constant 0.000000e+00 : f32
      %52 = vector.broadcast %cst_51 : f32 to vector<4x8x64xf32>
      %c0_52 = arith.constant 0 : index
      %c0_53 = arith.constant 0 : index
      %c0_54 = arith.constant 0 : index
      %53 = vector.load %arg11[%c0_52, %c0_53, %c0_54] : memref<4x8x64xf32, #tpu.memory_space<vmem>>, vector<4x8x64xf32>
      tpu.vector_store %arg11[%c0_52, %c0_53, %c0_54], %52 {strides = array<i32>} : memref<4x8x64xf32, #tpu.memory_space<vmem>>, vector<4x8x64xf32>,
    } else {
    }
    %c0 = arith.constant 0 : index
    %c0_1 = arith.constant 0 : index
    %c0_2 = arith.constant 0 : index
    %c0_3 = arith.constant 0 : index
    %3 = vector.load %arg5[%c0, %c0_1, %c0_2, %c0_3] : memref<1x4x16x64xbf16, #tpu.memory_space<vmem>>, vector<1x4x16x64xbf16>
    %4 = vector.shape_cast %3 : vector<1x4x16x64xbf16> to vector<4x16x64xbf16>
    %c0_4 = arith.constant 0 : index
    %c0_5 = arith.constant 0 : index
    %c0_6 = arith.constant 0 : index
    %c0_7 = arith.constant 0 : index
    %5 = vector.load %arg6[%c0_4, %c0_5, %c0_6, %c0_7] : memref<1x4x16x64xbf16, #tpu.memory_space<vmem>>, vector<1x4x16x64xbf16>
    %6 = vector.shape_cast %5 : vector<1x4x16x64xbf16> to vector<4x16x64xbf16>
    %c0_8 = arith.constant 0 : index
    %c0_9 = arith.constant 0 : index
    %c0_10 = arith.constant 0 : index
    %7 = vector.load %arg8[%c0_8, %c0_9, %c0_10] : memref<4x8x64xbf16, #tpu.memory_space<vmem>>, vector<4x8x64xbf16>
    %cst = arith.constant dense<0.000000e+00> : vector<4x8x16xf32>
    %8 = tpu.matmul %7, %4, %cst {dimension_numbers = #tpu.dot_dimension_numbers<[2], [2], [1], [1], [0, 0, 0, 1, 1, 1], [0], [0]>} : vector<4x8x64xbf16>, vector<4x16x64xbf16>, vector<4x8x16xf32> -> vector<4x8x16xf32>
    %c1_i32 = arith.constant 1 : i32
    %9 = arith.addi %arg3, %c1_i32 : i32
    %c16_i32 = arith.constant 16 : i32
    %10 = arith.muli %9, %c16_i32 : i32
    %c24_i32 = arith.constant 24 : i32
    %11 = arith.cmpi sgt, %10, %c24_i32 : i32
    %12 = arith.extui %11 : i1 to i32
    %c0_i32_11 = arith.constant 0 : i32
    %13 = arith.cmpi ne, %12, %c0_i32_11 : i32
    %14 = scf.if %13 -> (vector<4x8x16xf32>) {
      %c16_i32_35 = arith.constant 16 : i32
      %41 = arith.muli %arg3, %c16_i32_35 : i32
      %42 = tpu.iota {dimensions = array<i32: 2>} : vector<1x1x16xi32>
      %43 = vector.broadcast %41 : i32 to vector<1x1x16xi32>
      %44 = arith.addi %43, %42 : vector<1x1x16xi32>
      %c24_i32_36 = arith.constant 24 : i32
      %45 = vector.broadcast %c24_i32_36 : i32 to vector<1x1x16xi32>
      %46 = arith.cmpi slt, %44, %45 : vector<1x1x16xi32>
      %cst_37 = arith.constant -1.000000e+30 : f32
      %47 = vector.shape_cast %46 : vector<1x1x16xi1> to vector<1x1x16xi1>
      %48 = vector.broadcast %47 : vector<1x1x16xi1> to vector<4x8x16xi1>
      %49 = vector.broadcast %cst_37 : f32 to vector<4x8x16xf32>
      %50 = arith.select %48, %8, %49 : vector<4x8x16xi1>, vector<4x8x16xf32>
      scf.yield %50 : vector<4x8x16xf32>
    } else {
      scf.yield %8 : vector<4x8x16xf32>
    }
    %c0_12 = arith.constant 0 : index
    %c0_13 = arith.constant 0 : index
    %c0_14 = arith.constant 0 : index
    %15 = vector.load %arg9[%c0_12, %c0_13, %c0_14] : memref<4x8x1xf32, #tpu.memory_space<vmem>>, vector<4x8x1xf32>
    %cst_15 = arith.constant dense<0xFF800000> : vector<4x8xf32>
    %16 = vector.multi_reduction <maximumf>, %14, %cst_15 [2] : vector<4x8x16xf32> to vector<4x8xf32>
    %17 = vector.shape_cast %16 : vector<4x8xf32> to vector<4x8x1xf32>
    %18 = arith.maximumf %15, %17 : vector<4x8x1xf32>
    %19 = arith.subf %15, %18 : vector<4x8x1xf32>
    %20 = math.exp %19 : vector<4x8x1xf32>
    %21 = vector.broadcast %18 : vector<4x8x1xf32> to vector<4x8x16xf32>
    %22 = arith.subf %14, %21 : vector<4x8x16xf32>
    %23 = math.exp %22 : vector<4x8x16xf32>
    %c0_16 = arith.constant 0 : index
    %c0_17 = arith.constant 0 : index
    %c0_18 = arith.constant 0 : index
    %24 = vector.load %arg10[%c0_16, %c0_17, %c0_18] : memref<4x8x1xf32, #tpu.memory_space<vmem>>, vector<4x8x1xf32>
    %25 = arith.mulf %20, %24 : vector<4x8x1xf32>
    %cst_19 = arith.constant dense<0.000000e+00> : vector<4x8xf32>
    %26 = vector.multi_reduction <add>, %23, %cst_19 [2] : vector<4x8x16xf32> to vector<4x8xf32>
    %27 = vector.shape_cast %26 : vector<4x8xf32> to vector<4x8x1xf32>
    %28 = arith.addf %25, %27 : vector<4x8x1xf32>
    %c0_20 = arith.constant 0 : index
    %c0_21 = arith.constant 0 : index
    %c0_22 = arith.constant 0 : index
    %29 = vector.load %arg10[%c0_20, %c0_21, %c0_22] : memref<4x8x1xf32, #tpu.memory_space<vmem>>, vector<4x8x1xf32>
    tpu.vector_store %arg10[%c0_20, %c0_21, %c0_22], %28 {strides = array<i32>} : memref<4x8x1xf32, #tpu.memory_space<vmem>>, vector<4x8x1xf32>,
    %30 = arith.truncf %23 : vector<4x8x16xf32> to vector<4x8x16xbf16>
    %cst_23 = arith.constant dense<0.000000e+00> : vector<4x8x64xf32>
    %31 = tpu.matmul %30, %6, %cst_23 {dimension_numbers = #tpu.dot_dimension_numbers<[2], [1], [1], [2], [0, 0, 0, 1, 1, 2], [0], [0]>} : vector<4x8x16xbf16>, vector<4x16x64xbf16>, vector<4x8x64xf32> -> vector<4x8x64xf32>
    %c0_24 = arith.constant 0 : index
    %c0_25 = arith.constant 0 : index
    %c0_26 = arith.constant 0 : index
    %32 = vector.load %arg11[%c0_24, %c0_25, %c0_26] : memref<4x8x64xf32, #tpu.memory_space<vmem>>, vector<4x8x64xf32>
    %33 = vector.broadcast %20 : vector<4x8x1xf32> to vector<4x8x64xf32>
    %34 = arith.mulf %33, %32 : vector<4x8x64xf32>
    %35 = arith.addf %34, %31 : vector<4x8x64xf32>
    %c0_27 = arith.constant 0 : index
    %c0_28 = arith.constant 0 : index
    %c0_29 = arith.constant 0 : index
    %36 = vector.load %arg11[%c0_27, %c0_28, %c0_29] : memref<4x8x64xf32, #tpu.memory_space<vmem>>, vector<4x8x64xf32>
    tpu.vector_store %arg11[%c0_27, %c0_28, %c0_29], %35 {strides = array<i32>} : memref<4x8x64xf32, #tpu.memory_space<vmem>>, vector<4x8x64xf32>,
    %c0_30 = arith.constant 0 : index
    %c0_31 = arith.constant 0 : index
    %c0_32 = arith.constant 0 : index
    %37 = vector.load %arg9[%c0_30, %c0_31, %c0_32] : memref<4x8x1xf32, #tpu.memory_space<vmem>>, vector<4x8x1xf32>
    tpu.vector_store %arg9[%c0_30, %c0_31, %c0_32], %18 {strides = array<i32>} : memref<4x8x1xf32, #tpu.memory_space<vmem>>, vector<4x8x1xf32>,
    %c1_i32_33 = arith.constant 1 : i32
    %38 = arith.cmpi eq, %arg3, %c1_i32_33 : i32
    %39 = arith.extui %38 : i1 to i32
    %c0_i32_34 = arith.constant 0 : i32
    %40 = arith.cmpi ne, %39, %c0_i32_34 : i32
    scf.if %40 {
      %c0_35 = arith.constant 0 : index
      %c0_36 = arith.constant 0 : index
      %c0_37 = arith.constant 0 : index
      %41 = vector.load %arg10[%c0_35, %c0_36, %c0_37] : memref<4x8x1xf32, #tpu.memory_space<vmem>>, vector<4x8x1xf32>
      %42 = tpu.reciprocal %41 {approx = true} : vector<4x8x1xf32> -> vector<4x8x1xf32>
      %c0_38 = arith.constant 0 : index
      %c0_39 = arith.constant 0 : index
      %c0_40 = arith.constant 0 : index
      %43 = vector.load %arg11[%c0_38, %c0_39, %c0_40] : memref<4x8x64xf32, #tpu.memory_space<vmem>>, vector<4x8x64xf32>
      %44 = vector.broadcast %42 : vector<4x8x1xf32> to vector<4x8x64xf32>
      %45 = arith.mulf %43, %44 : vector<4x8x64xf32>
      %46 = arith.truncf %45 : vector<4x8x64xf32> to vector<4x8x64xbf16>
      %c0_41 = arith.constant 0 : index
      %c0_42 = arith.constant 0 : index
      %c0_43 = arith.constant 0 : index
      %c0_44 = arith.constant 0 : index
      %47 = vector.load %arg7[%c0_41, %c0_42, %c0_43, %c0_44] : memref<1x4x8x64xbf16, #tpu.memory_space<vmem>>, vector<1x4x8x64xbf16>
      %48 = vector.shape_cast %47 : vector<1x4x8x64xbf16> to vector<4x8x64xbf16>
      %49 = vector.shape_cast %46 : vector<4x8x64xbf16> to vector<1x4x8x64xbf16>
      tpu.vector_store %arg7[%c0_41, %c0_42, %c0_43, %c0_44], %49 {strides = array<i32>} : memref<1x4x8x64xbf16, #tpu.memory_space<vmem>>, vector<1x4x8x64xbf16>,
    } else {
    }
    return
  }
  func.func @transform_0(%arg0: i32, %arg1: i32, %arg2: i32, %arg3: i32) -> (i32, i32, i32, i32) {
    %c0_i32 = arith.constant 0 : i32
    %c0_i32_0 = arith.constant 0 : i32
    return %arg0, %arg1, %arg2, %c0_i32 : i32, i32, i32, i32
  }
  func.func @transform_1(%arg0: i32, %arg1: i32, %arg2: i32, %arg3: i32) -> (i32, i32, i32, i32) {
    %c0_i32 = arith.constant 0 : i32
    %c0_i32_0 = arith.constant 0 : i32
    return %arg0, %arg1, %arg3, %c0_i32 : i32, i32, i32, i32
  }
  func.func @transform_2(%arg0: i32, %arg1: i32, %arg2: i32, %arg3: i32) -> (i32, i32, i32, i32) {
    %c0_i32 = arith.constant 0 : i32
    %c0_i32_0 = arith.constant 0 : i32
    return %arg0, %arg1, %arg3, %c0_i32 : i32, i32, i32, i32
  }
  func.func @transform_3(%arg0: i32, %arg1: i32, %arg2: i32, %arg3: i32) -> (i32, i32, i32, i32) {
    %c0_i32 = arith.constant 0 : i32
    %c0_i32_0 = arith.constant 0 : i32
    return %arg0, %arg1, %arg2, %c0_i32 : i32, i32, i32, i32
  }
}

</mosaic_0001>

<bundles_post_ra>
// kernel: tpu_custom_call.1
= control target key start
LH: loop header
LB: loop body
LE: loop exit
PB: predicated region body
PF: predicated region fallthrough
CT: control target
= control target key end

     0   :  { %s2226_s0 = inlined_call_operand.hbm [shape: bf16[2,4,32,64], index: 0, kind: input, shape index: {}]   ;;  %s2227_s1 = inlined_call_operand.hbm [shape: bf16[2,4,32,64], index: 1, kind: input, shape index: {}]   ;;  %s2228_s2 = inlined_call_operand.hbm [shape: bf16[2,4,32,64], index: 2, kind: input, shape index: {}]   ;;  %s2229_s3 = inlined_call_operand.hbm [shape: bf16[2,4,32,64], index: 3, kind: output, shape index: {}]  }
   0x1   :  { %2239 = sst [smem:[#allocation33_spill]] %s2229_s3 }
   0x2   :  { %8 = vsyncpa [#allocation7], 0 }
   0x3   :  { %10 = vsyncpa [#allocation7 + $0x1], 0 }
   0x4   :  { %11 = vsyncpa [#allocation10], 0 }
   0x5   :  { %13 = vsyncpa [#allocation10 + $0x1], 0 }
   0x6   :  { %14 = vsyncpa [#allocation8], 0 }
   0x7   :  { %16 = vsyncpa [#allocation8 + $0x1], 0  ;;  %s1793_s12 = smov 0   ;;  %s1795_s13 = smov 0  }
   0x8   :  { %s1797_s14 = smov 0   ;;  %s1799_s15 = smov 0  }
   0x9   :  { %s1801_s16 = smov 0   ;;  %s1803_s17 = smov 0  }
   0xa   :  { %s1805_s18 = smov 0   ;;  %s1807_s19 = smov 0  }
   0xb   :  { %s1809_s20 = smov 0   ;;  %s1811_s21 = smov 0  }
   0xc   :  { %s1813_s22 = smov 0   ;;  %s1815_s23 = smov 0  }
   0xd   :  { %s1817_s24 = smov 0  }
   0xe LB: > { %2240 = sst [smem:[#allocation22_spill]] %s1709_s15  ;;  %s1859_s25 = sadd.s32 4294967295, %s1745_s24   ;;  %s1745_s24 = sphi %s1817_s24, %s22_s24   ;;  %s1741_s23 = sphi %s1815_s23, %s2287_s23   ;;  %s1737_s22 = sphi %s1813_s22, %s2286_s22   ;;  %s1733_s21 = sphi %s1811_s21, %s2285_s21   ;;  %s1729_s20 = sphi %s1809_s20, %s2284_s20   ;;  %s1725_s19 = sphi %s1807_s19, %s2283_s19   ;;  %s1721_s18 = sphi %s1805_s18, %s2282_s18   ;;  %s1717_s17 = sphi %s1803_s17, %s2272_s17   ;;  %s1713_s16 = sphi %s1801_s16, %s2281_s16   ;;  %s1709_s15 = sphi %s1799_s15, %s2280_s15   ;;  %s1705_s14 = sphi %s1797_s14, %s2279_s14   ;;  %s1701_s13 = sphi %s1795_s13, %s2278_s13   ;;  %s1697_s12 = sphi %s1793_s12, %s2277_s12  }
   0xf   : > { %2241 = sst [smem:[#allocation23_spill]] %s1717_s17  ;;  %s37_s27 = sadd.s32 1, %s1733_s21 }
  0x10   : > { %2242 = sst [smem:[#allocation24_spill]] %s1725_s19  ;;  %s40_s28 = sadd.s32 1, %s1737_s22 }
  0x11   : > { %2243 = sst [smem:[#allocation25_spill]] %s1729_s20  ;;  %p38_p0 = scmp.ge.s32.totalorder %s37_s27, 2 }
  0x12   : > { %s48_s29 = sadd.s32 1, %s1741_s23  ;;  %p66_p1 = scmp.ne.s32.totalorder %s1717_s17, %s1713_s16 }
  0x13   : > { %s2289_s27 = smov (%p38_p0, %s37_s27), 0  ;;  %s2291_s28 = smov (!%p38_p0, %s40_s28), %s1737_s22 }
  0x14   : > { %2244 = sst [smem:[#allocation26_spill]] %s2289_s27  ;;  %p67_p2 = scmp.eq.s32.totalorder %s1745_s24, 0 }
  0x15   : > { %p72_p3 = scmp.ne.s32.totalorder %s1713_s16, %s1709_s15  ;;  %p42_p4 = scmp.ge.s32.totalorder %s2291_s28, 4 }
  0x16   : > { %p73_p5 = scmp.eq.s32.totalorder %s1859_s25, 0  ;;  %p1880_p6 = por %p67_p2, %p66_p1 }
  0x17   : > { %s85_s5 = ssub.s32 %s1733_s21, %s2289_s27  ;;  %s2293_s28 = smov (%p42_p4, %s2291_s28), 0 }
  0x18   : > { %2246 = sst [smem:[#allocation27_spill]] %s2293_s28  ;;  %s2295_s29 = smov (!%p42_p4, %s48_s29), %s1741_s23 }
  0x19   : > { %s55_s6 = ssub.s32 %s1737_s22, %s2293_s28  ;;  %p1896_p7 = por %p73_p5, %p72_p3 }
  0x1a   : > { %p50_p8 = scmp.ge.s32.totalorder %s2295_s29, 2  ;;  %s89_s8 = sadd.s32 1, %s1705_s14 }
  0x1b   : > { %p96_p9 = scmp.ne.s32.totalorder %s1705_s14, %s1701_s13  ;;  %p102_p10 = scmp.ne.s32.totalorder %s1701_s13, %s1697_s12 }
  0x1c   : > { %s2297_s29 = smov (%p50_p8, %s2295_s29), 0  ;;  %p160_p13 = scmp.eq.s32.totalorder %s1859_s25, 15 }
  0x1d   : > { %2248 = sst [smem:[#allocation28_spill]] %s2297_s29  ;;  %p1909_p11 = por %p96_p9, %p67_p2 }
  0x1e   : > { %p1915_p12 = por %p102_p10, %p73_p5  ;;  %s52_s11 = ssub.s32 %s1741_s23, %s2297_s29 }
  0x1f   : > { %s56_s30 = sor.u32 %s55_s6, %s52_s11  ;;  %s86_s26 = sor.u32 %s85_s5, %s52_s11 }
  0x20   : > { %p57_p0 = scmp.eq.s32.totalorder %s56_s30, 0  ;;  %p87_p4 = scmp.eq.s32.totalorder %s86_s26, 0 }
  0x21   : > { %p1925_p8 = por %p160_p13, %p66_p1  ;;  %s2253_s28 = sadd.s32 4294967294, %s1745_s24  }
  0x22   : > { %p166_p2 = scmp.eq.s32.totalorder %s2253_s28, 15  ;;  %s2254_s27 = sadd.s32 1, %s1717_s17 }
  0x23   : > { %s2251_s12 = scalar_select %p1925_p8, 1, 0 }
  0x24   : > { %s1934_s3 = scalar_select %p57_p0, %s1717_s17, %s2254_s27  }
  0x25   : > { %2252 = sst [smem:[#allocation29_spill]] %s2251_s12  ;;  %p1942_p5 = por %p166_p2, %p72_p3 }
  0x26   : > { %2255 = sst [smem:[#allocation30_spill]] %s1934_s3  ;;  %p1230_p9 = scmp.ge.s32.totalorder %s1745_s24, 16 }
  0x27   : > { %s1937_s19 = scalar_select %p87_p4, %s1705_s14, %s89_s8  }
  0x28   : > { %s2257_s29 = scalar_select %p1942_p5, 1, 0 }
  0x29   : > { %2256 = sst [smem:[#allocation31_spill]] %s1937_s19  ;;  %182 = sbr.rel (%p1230_p9) target bundleno = 88 (0x58), region = 16 }
  0x2a   : > { %2258 = sst [smem:[#allocation32_spill]] %s2257_s29  ;;  %s186_s26 = sand.u32 (!%p1230_p9), 1, %s1717_s17  }
  0x2b   : > { %s1232_s28 = sshll.u32 (!%p1230_p9), %s1741_s23, 4  ;;  %s1231_s30 = sshll.u32 (!%p1230_p9), %s186_s26, 4 }
  0x2c   : > { %s198_s27 = sadd.s32 (!%p1230_p9), %s1737_s22, %s1232_s28  ;;  %s190_s6 = scalar_lea.vmem (!%p1230_p9), [#allocation6], %s1231_s30 }
  0x2d   : > { %s1233_s5 = sshll.u32 (!%p1230_p9), %s198_s27, 6  ;;  %s201_s8 = sshll.u32 (!%p1230_p9), %s190_s6, 4  ;;  %s202_s8 = int_to_ptr.vmem [resolvable:$true] %s201_s8 }
  0x2e   : > { %s200_s19 = scalar_lea.hbm %s2226_s0, %s1233_s5  ;;  %s187_s29 = scalar_lea.sflag [#allocation7], %s186_s26 }
  0x2f   : > { %s1591_s15 = scalar_lea.vmem %s202_s8, 256  ;;  %s1747_s12 = smov [#allocation6]  }
  0x30   : > { %p1592_p1 = scmp.ne.s32.totalorder %s202_s8, %s1591_s15  ;;  %s1595_s17 = sshll.u32 %s1747_s12, 4  ;;  %s1596_s17 = int_to_ptr.vmem [resolvable:$false] %s1595_s17 }
  0x31   : > { %s1597_s20 = scalar_lea.vmem %s1596_s17, 512  ;;  %p1598_p13 = scmp.lt.s32.totalorder %s202_s8, %s1596_s17 }
  0x32   : > { %p1593_p3 = pnand %p1592_p1, %p1880_p6  ;;  %p1599_p0 = scmp.lt.s32.totalorder %s1597_s20, %s1591_s15 }
  0x34   : > { %p1594_p10 = pneg %p1593_p3  ;;  %p1600_p4 = por %p1599_p0, %p1598_p13 }
  0x36   : > { %p1601_p2 = pnand %p1600_p4, %p1594_p10 }
  0x38   : > { %1604 = shalt.err (!%p1601_p2)
}
  0x39   : > { %s1748_s30 = smov 256   ;;  %s1749_s3 = smov 64  }
  0x3a   : > { %s1750_s27 = smov 4  }
  0x3b   : > { %1352 = dma.hbm_to_vmem [thread:$0]  (%p1880_p6), %s200_s19, 256, %s202_s8, %s187_s29, %s1748_s30, %s1749_s3, %s1750_s27  }
  0x3c   : > { %s213_s12 = sand.u32 1, %s1705_s14   ;;  %s211_s17 = sand.u32 1, %s1745_s24  }
  0x3d   : > { %s1961_s15 = sshll.u32 %s213_s12, 5  ;;  %s1235_s20 = sshll.u32 %s1733_s21, 1 }
  0x3e   : > { %s224_s26 = sadd.s32 %s1235_s20, %s1232_s28  ;;  %s215_s4 = scalar_lea.vmem [#allocation9], %s1961_s15 }
  0x3f   : > { %s239_s19 = sshll.u32 %s215_s4, 4  ;;  %s1237_s29 = sshll.u32 %s224_s26, 6  ;;  %s240_s19 = int_to_ptr.vmem [resolvable:$true] %s239_s19 }
  0x40   : > { %s1353_s5 = scalar_select %p1909_p11, [#allocation0], [#allocation17] }
  0x41   : > { %s1751_s6 = smov 256   ;;  %s1752_s11 = smov 128  }
  0x42   : > { %1354 = sst [smem:[#allocation14]] (%p1909_p11), %s1751_s6  ;;  %s1753_s30 = smov 2  }
  0x43   : > { %s231_s8 = sld [smem:[%s1353_s5]]   ;;  %s1754_s28 = smov 64  }
  0x44   : > { %1355 = sst [smem:[#allocation14 + $0x1]] (%p1909_p11), %s1752_s11  ;;  %s226_s12 = scalar_lea.hbm %s2227_s1, %s1237_s29 }
  0x45   : > { %1356 = sst [smem:[#allocation14 + $0x2]] (%p1909_p11), %s1753_s30  ;;  %s1755_s20 = smov 4  }
  0x46   : > { %1357 = sst [smem:[#allocation14 + $0x3]] (%p1909_p11), %s1754_s28  ;;  %s212_s5 = scalar_lea.sflag [#allocation10], %s211_s17 }
  0x47   : > { %1358 = sst [smem:[#allocation14 + $0x4]] (%p1909_p11), %s1754_s28  ;;  %s1756_s6 = smov 131072  }
  0x48   : > { %1359 = sst [smem:[#allocation14 + $0x5]] (%p1909_p11), %s1755_s20 }
  0x49   : > { %s1238_s26 = sshll.u32 %s231_s8, 26 }
  0x4a   : > { %s1239_s4 = sadd.s32 134217728, %s1238_s26 }
  0x4b   : > { %1360 = dma.general (%p1909_p11), %s226_s12, 512, %s240_s19, %s212_s5, %s1756_s6, [#allocation14], %s1239_s4, 0  }
  0x4c   : > { %s277_s28 = scalar_lea.hbm %s2228_s2, %s1237_s29  ;;  %s266_s8 = scalar_lea.vmem [#allocation11], %s1961_s15 }
  0x4d   : > { %s1361_s3 = scalar_select %p1909_p11, [#allocation0], [#allocation18] }
  0x4e   : > { %s290_s27 = sshll.u32 %s266_s8, 4  ;;  %s1757_s19 = smov 256   ;;  %s291_s27 = int_to_ptr.vmem [resolvable:$true] %s290_s27 }
  0x4f   : > { %s282_s17 = sld [smem:[%s1361_s3]]   ;;  %s1758_s12 = smov 128  }
  0x50   : > { %1362 = sst [smem:[#allocation16]] (%p1909_p11), %s1757_s19  ;;  %s1759_s20 = smov 2  }
  0x51   : > { %1363 = sst [smem:[#allocation16 + $0x1]] (%p1909_p11), %s1758_s12  ;;  %s1760_s26 = smov 64  }
  0x52   : > { %1364 = sst [smem:[#allocation16 + $0x2]] (%p1909_p11), %s1759_s20  ;;  %s1761_s15 = smov 4  }
  0x53   : > { %1365 = sst [smem:[#allocation16 + $0x3]] (%p1909_p11), %s1760_s26  ;;  %s1762_s6 = smov 131072  }
  0x54   : > { %1366 = sst [smem:[#allocation16 + $0x4]] (%p1909_p11), %s1760_s26 }
  0x55   : > { %s1244_s29 = sshll.u32 %s282_s17, 26  ;;  %1367 = sst [smem:[#allocation16 + $0x5]] (%p1909_p11), %s1761_s15 }
  0x56   : > { %s1245_s4 = sadd.s32 134217728, %s1244_s29 }
  0x57   : > { %1368 = dma.general (%p1909_p11), %s277_s28, 512, %s291_s27, %s212_s5, %s1762_s6, [#allocation16], %s1245_s4, 0  }
  0x58 PF: > { %p1246_p6 = scmp.ge.s32.totalorder %s1745_s24, 1  ;;  %p311_p9 = scmp.lt.s32.totalorder %s1745_s24, 17 }
  0x5a   : > { %p312_p1 = pnand %p1246_p6, %p311_p9 }
  0x5b   : > { %s2009_s11 = sand.u32 (!%p312_p1), 1, %s1713_s16  }
  0x5c   : > { %315 = sbr.rel (%p312_p1) target bundleno = 997 (0x3e5), region = 32  ;;  %s1247_s30 = sshll.u32 (!%p312_p1), %s2009_s11, 4 }
  0x5d   : > { %s318_s3 = scalar_lea.sflag (!%p312_p1), [#allocation7], %s2009_s11  ;;  %s321_s8 = scalar_lea.vmem (!%p312_p1), [#allocation6], %s1247_s30 }
  0x61   : > { %1684 = dma.done.wait (%p1896_p7), %s318_s3, 256  }
  0x62   : > { %1686 = vsyncadd (%p1896_p7), %s318_s3, 4294967040  ;;  %s326_s9 = sand.u32 1, %s1859_s25   ;;  %s328_s5 = sand.u32 1, %s1701_s13  }
  0x63   : > { %s1248_s28 = sshll.u32 %s328_s5, 5  ;;  %s327_s27 = scalar_lea.sflag [#allocation10], %s326_s9 }
  0x64   : > { %s2019_s17 = scalar_lea.vmem [#allocation9], %s1248_s28 }
  0x65   : > { %1688 = dma.done.wait (%p1915_p12), %s327_s27, 1024  }
  0x66   : > { %1690 = vsyncadd (%p1915_p12), %s327_s27, 4294966272  ;;  %s2025_s19 = scalar_lea.vmem [#allocation11], %s1248_s28  ;;  %s2027_s12 = scalar_lea.vmem [#allocation12], %s1247_s30 }
  0x67   : > { %p1251_p7 = scmp.ne.s32.totalorder %s1721_s18, 0 }
  0x69   : > { %382 = sbr.rel (%p1251_p7) target bundleno = 119 (0x77), region = 48 }
  0x6e   : > { %v1280_v0 = vld [vmem:[%s321_s8] sm:$0xff]   ;;  %v1287_v1 = vld [vmem:[%s321_s8 + $0x8] sm:$0xff]   ;;  %vm404_vm0 = vcmask 7168   ;;  %v1763_v6 = vmov -inf   ;;  %v1764_v7 = vmov 0.0   ;;  %vm413_vm1 = vcmask 523264  }
  0x6f   : > { %v1281_v2 = vunpack.c.l.bf16 %v1280_v0  ;;  %v1282_v3 = vunpack.c.h.bf16 %v1280_v0  ;;  %v1285_v4 = vunpack.c.l.bf16 %v1287_v1  ;;  %v1286_v5 = vunpack.c.h.bf16 %v1287_v1  ;;  %405 = vst.msk [vmem:[#allocation3] sm:$0xff] %vm404_vm0, %v1763_v6  ;;  %406 = vst.msk [vmem:[#allocation3 + $0x8] sm:$0xff] %vm404_vm0, %v1763_v6 }
  0x70   : > { %407 = vst.msk [vmem:[#allocation3 + $0x10] sm:$0xff] %vm404_vm0, %v1763_v6  ;;  %408 = vst.msk [vmem:[#allocation3 + $0x18] sm:$0xff] %vm404_vm0, %v1763_v6  ;;  %vm399_vm2 = vcmask 519168  }
  0x71   : > { %409 = vst.msk [vmem:[#allocation4] sm:$0xff] %vm404_vm0, %v1764_v7  ;;  %410 = vst.msk [vmem:[#allocation4 + $0x8] sm:$0xff] %vm404_vm0, %v1764_v7  ;;  %v391_v8 = vmul.f32 0.125, %v1281_v2  ;;  %v392_v9 = vmul.f32 0.125, %v1282_v3  ;;  %v393_v10 = vmul.f32 0.125, %v1285_v4  ;;  %v394_v11 = vmul.f32 0.125, %v1286_v5 }
  0x72   : > { %411 = vst.msk [vmem:[#allocation4 + $0x10] sm:$0xff] %vm404_vm0, %v1764_v7  ;;  %412 = vst.msk [vmem:[#allocation4 + $0x18] sm:$0xff] %vm404_vm0, %v1764_v7 }
  0x73   : > { %414 = vst.msk [vmem:[#allocation5] sm:$0xff] %vm413_vm1, %v1764_v7  ;;  %415 = vst.msk [vmem:[#allocation5 + $0x8] sm:$0xff] %vm413_vm1, %v1764_v7  ;;  %v395_v12 = vpack.c.bf16 %v391_v8, %v391_v8  ;;  %v396_v13 = vpack.c.bf16 %v392_v9, %v392_v9  ;;  %v397_v14 = vpack.c.bf16 %v393_v10, %v393_v10 }
  0x74   : > { %416 = vst.msk [vmem:[#allocation5 + $0x10] sm:$0xff] %vm413_vm1, %v1764_v7  ;;  %417 = vst.msk [vmem:[#allocation5 + $0x18] sm:$0xff] %vm413_vm1, %v1764_v7  ;;  %v398_v15 = vpack.c.bf16 %v394_v11, %v394_v11 }
  0x75   : > { %400 = vst.msk [vmem:[#allocation2] sm:$0xf] %vm399_vm2, %v395_v12  ;;  %401 = vst.msk [vmem:[#allocation2 + $0x4] sm:$0xf] %vm399_vm2, %v396_v13 }
  0x76   : > { %402 = vst.msk [vmem:[#allocation2 + $0x8] sm:$0xf] %vm399_vm2, %v397_v14  ;;  %403 = vst.msk [vmem:[#allocation2 + $0xc] sm:$0xf] %vm399_vm2, %v398_v15 }
  0x77 PF: > { %v1545_v16 = vld [vmem:[%s2019_s17] sm:$0xff]   ;;  %v1765_v17 = vmov 0.0   ;;  %vm443_vm3 = vcmask 523264   ;;  %v1546_v18 = vld [vmem:[%s2019_s17 + $0x8] sm:$0xff]   ;;  %vm1766_vm4 = vmmov 0   ;;  %v1547_v21 = vld [vmem:[%s2019_s17 + $0x10] sm:$0xff]   ;;  %v650_v29 = vlaneseq }
  0x78   : > { %1304 = vmatprep.subr.bf16.mxu0 %v1765_v17  ;;  %1310 = vmatprep.subr.bf16.mxu1 %v1765_v17  ;;  %v448_v19 = vsel %vm443_vm3, %v1545_v16, 0  ;;  %v499_v20 = vsel %vm443_vm3, %v1546_v18, 0  ;;  %v1548_v23 = vld [vmem:[%s2019_s17 + $0x18] sm:$0xff]   ;;  %v550_v25 = vsel %vm443_vm3, %v1547_v21, 0  ;;  %s1277_s25 = sshll.u32 %s1721_s18, 4  ;;  %vm676_vm8 = vcmask 130048  }
  0x79   : > { %1305 = vmatpush3.bf16.xpose.msra.mxu0 %v448_v19  ;;  %1306 = vmatprep.mubr.msk.bf16.mxu0 %vm1766_vm4, %v1765_v17  ;;  %v601_v26 = vsel %vm443_vm3, %v1548_v23, 0  ;;  %s1278_s7 = sadd.s32 16, %s1277_s25  ;;  %v651_v30 = vand.u32 127, %v650_v29  ;;  %v652_v31 = vstv %s1277_s25  ;;  %v1767_v5 = vmov 0   ;;  %v672_v6 = vld [vmem:[#allocation3] sm:$0xff]  ;;  %v2099_v9 = vld [vmem:[#allocation3 + $0x8] sm:$0xff] }
  0x7a   : > { %1311 = vmatpush3.bf16.xpose.msra.mxu1 %v499_v20  ;;  %1312 = vmatprep.mubr.msk.bf16.mxu1 %vm1766_vm4, %v1765_v17  ;;  %p645_p11 = scmp.gt.s32.totalorder %s1278_s7, 24  ;;  %p1261_p12 = scmp.le.s32.totalorder %s1278_s7, 24  ;;  %vm761_vm9 = vcmask 7168   ;;  %v674_v14 = vld [vmem:[#allocation3 + $0x10] sm:$0xff]  ;;  %v2105_v19 = vld [vmem:[#allocation3 + $0x18] sm:$0xff] }
  0x7b   : > { %1316 = vmatprep.subr.bf16.mxu0 %v1765_v17  ;;  %1322 = vmatprep.subr.bf16.mxu1 %v1765_v17  ;;  %v653_v32 = vadd.s32 %v652_v31, %v651_v30  ;;  %p1271_p3 = scmp.ne.s32.totalorder %s1721_s18, 1 }
  0x7c   : > { %v434_v22 = vld [vmem:[#allocation2] sm:$0xf]  ;;  %v435_v24 = vld [vmem:[#allocation2 + $0x4] sm:$0xf]  ;;  %s1373_s10 = scalar_select %p645_p11, 1, 0  ;;  %1543 = vset.pattern.permute.xlu0 %v1767_v5  ;;  %1544 = vset.pattern.permute.xlu1 %v1767_v5 }
  0x7d   : > { %v436_v27 = vld [vmem:[#allocation2 + $0x8] sm:$0xf]  ;;  %v437_v28 = vld [vmem:[#allocation2 + $0xc] sm:$0xf]  ;;  %s1390_s20 = scalar_select %p1261_p12, 1, 0 }
  0x7e   : > { %v1374_v33 = vstv %s1373_s10  ;;  %vm654_vm5 = vcmp.lt.s32.totalorder %v653_v32, 24  ;;  %v966_v5 = vld [vmem:[#allocation5] sm:$0xff] }
  0x7f   : > { %v1391_v34 = vstv %s1390_s20  ;;  %vm2061_vm6 = vcmp.ne.s32.totalorder %v1374_v33, 0 }
  0x80   : > { %1307 = vmatmul.mubr.msk.bf16.vlgmr.msra.gmra.mxu0 %vm443_vm3, %v434_v22  ;;  %vm2065_vm7 = vcmp.ne.s32.totalorder %v1391_v34, 0 }
  0x81   : > { %1313 = vmatmul.mubr.msk.bf16.vlgmr.msra.gmra.mxu1 %vm443_vm3, %v435_v24  ;;  %1317 = vmatpush3.bf16.xpose.msra.mxu0 %v550_v25  ;;  %v1549_v24 = vld [vmem:[%s2025_s19] sm:$0xff]   ;;  %v1550_v25 = vld [vmem:[%s2025_s19 + $0x8] sm:$0xff]  }
  0x82   : > { %1323 = vmatpush3.bf16.xpose.msra.mxu1 %v601_v26  ;;  %1318 = vmatprep.mubr.msk.bf16.mxu0 %vm1766_vm4, %v1765_v17 }
  0x83   : > { %1324 = vmatprep.mubr.msk.bf16.mxu1 %vm1766_vm4, %v1765_v17  ;;  %1328 = vmatprep.subr.bf16.mxu0 %v1765_v17 }
  0x84   : > { %1334 = vmatprep.subr.bf16.mxu1 %v1765_v17 }
  0x88   : > { %1319 = vmatmul.mubr.msk.bf16.vlgmr.msra.gmra.mxu0 %vm443_vm3, %v436_v27 }
  0x89   : > { %1325 = vmatmul.mubr.msk.bf16.vlgmr.msra.gmra.mxu1 %vm443_vm3, %v437_v28  ;;  %1330 = vmatprep.mubr.msk.bf16.mxu0 %vm1766_vm4, %v1765_v17 }
  0x8a   : > { %1336 = vmatprep.mubr.msk.bf16.mxu1 %vm1766_vm4, %v1765_v17  ;;  %1329 = vmatpush3.bf16.msra.mxu0 %v1549_v24 }
  0x8b   : > { %1335 = vmatpush3.bf16.msra.mxu1 %v1550_v25  ;;  %1340 = vmatprep.subr.bf16.mxu0 %v1765_v17 }
  0x8c   : > { %1346 = vmatprep.subr.bf16.mxu1 %v1765_v17 }
 0x140   : > { %v484_v36 = vpop.f32.mrf.mxu0 }
 0x141   : > { %v657_v38 = vsel %vm654_vm5, %v484_v36, -1e+30  ;;  %v535_v39 = vpop.f32.mrf.mxu1 }
 0x142   : > { %v1376_v40 = vsel %vm2061_vm6, %v657_v38, 0  ;;  %v658_v41 = vsel %vm654_vm5, %v535_v39, -1e+30  ;;  %v1308_v42 = vpop.f32.mrf.mxu0 }
 0x143   : > { %v1380_v43 = vsel %vm2061_vm6, %v658_v41, 0  ;;  %v1314_v44 = vpop.f32.mrf.mxu1  ;;  %v2077_v45 = vsel %vm2065_vm7, %v484_v36, %v1376_v40  ;;  %v1551_v40 = vld [vmem:[%s2025_s19 + $0x10] sm:$0xff]  }
 0x144   : > { %v487_v46 = vpop.f32.mrf.mxu0  ;;  %v677_v47 = vsel %vm676_vm8, %v2077_v45, -inf  ;;  %v2083_v49 = vsel %vm2065_vm7, %v535_v39, %v1380_v43 }
 0x145   : > { %v538_v48 = vpop.f32.mrf.mxu1  ;;  %678 = vmax.xlane.f32.xlu0 %v677_v47  ;;  %v680_v53 = vsel %vm676_vm8, %v2083_v49, -inf }
 0x146   : > { %v1309_v50 = vpop.f32.mrf.mxu0 }
 0x147   : > { %v1315_v51 = vpop.f32.mrf.mxu1 }
 0x148   : > { %v586_v52 = vpop.f32.mrf.mxu0 }
 0x149   : > { %v659_v54 = vsel %vm654_vm5, %v586_v52, -1e+30  ;;  %v637_v55 = vpop.f32.mrf.mxu1  ;;  %681 = vmax.xlane.f32.xlu0 %v680_v53 }
 0x14a   : > { %v1384_v56 = vsel %vm2061_vm6, %v659_v54, 0  ;;  %v660_v57 = vsel %vm654_vm5, %v637_v55, -1e+30  ;;  %v1320_v58 = vpop.f32.mrf.mxu0 }
 0x14b   : > { %v1388_v59 = vsel %vm2061_vm6, %v660_v57, 0  ;;  %v1326_v60 = vpop.f32.mrf.mxu1  ;;  %v1401_v61 = vsel %vm2065_vm7, %v586_v52, %v1384_v56 }
 0x14c   : > { %v589_v62 = vpop.f32.mrf.mxu0  ;;  %v683_v63 = vsel %vm676_vm8, %v1401_v61, -inf  ;;  %v1405_v1 = vsel %vm2065_vm7, %v637_v55, %v1388_v59  ;;  %v737_v59 = vld [vmem:[#allocation4] sm:$0xff] }
 0x14d   : > { %v640_v0 = vpop.f32.mrf.mxu1  ;;  %684 = vmax.xlane.f32.xlu1 %v683_v63  ;;  %v686_v4 = vsel %vm676_vm8, %v1405_v1, -inf  ;;  %v738_v62 = vld [vmem:[#allocation4 + $0x8] sm:$0xff] }
 0x14e   : > { %v1321_v2 = vpop.f32.mrf.mxu0 }
 0x14f   : > { %v1327_v3 = vpop.f32.mrf.mxu1 }
 0x151   : > { %687 = vmax.xlane.f32.xlu1 %v686_v4  ;;  %v739_v4 = vld [vmem:[#allocation4 + $0x10] sm:$0xff] }
 0x1ce   : > { %v679_v7 = vpop.xlane.xlu0 %678 }
 0x1cf   : > { %v689_v8 = vmax.f32 %v672_v6, %v679_v7 }
 0x1d1   : > { %v693_v10 = vsub.f32 %v672_v6, %v689_v8  ;;  %1002 = vst.msk [vmem:[#allocation3] sm:$0xff] %vm761_vm9, %v689_v8  ;;  %707 = vperm.xlu0 %1543, %v689_v8   ;;  %v740_v8 = vld [vmem:[#allocation4 + $0x18] sm:$0xff] }
 0x1d2   : > { %v682_v11 = vpop.xlane.xlu0 %681 }
 0x1d3   : > { %v697_v12 = vmul.f32 1.442695, %v693_v10  ;;  %v690_v13 = vmax.f32 %v2099_v9, %v682_v11  ;;  %v967_v11 = vld [vmem:[#allocation5 + $0x8] sm:$0xff] }
 0x1d5   : > { %1553 = vpow2.f32 %v697_v12  ;;  %v694_v15 = vsub.f32 %v2099_v9, %v690_v13  ;;  %1003 = vst.msk [vmem:[#allocation3 + $0x8] sm:$0xff] %vm761_vm9, %v690_v13  ;;  %712 = vperm.xlu1 %1544, %v690_v13  }
 0x1d6   : > { %v685_v16 = vpop.xlane.xlu1 %684 }
 0x1d7   : > { %v691_v18 = vmax.f32 %v674_v14, %v685_v16  ;;  %v699_v50 = vmul.f32 1.442695, %v694_v15 }
 0x1d9   : > { %v695_v20 = vsub.f32 %v674_v14, %v691_v18  ;;  %1004 = vst.msk [vmem:[#allocation3 + $0x10] sm:$0xff] %vm761_vm9, %v691_v18  ;;  %717 = vperm.xlu1 %1544, %v691_v18  }
 0x1da   : > { %v688_v21 = vpop.xlane.xlu1 %687 }
 0x1db   : > { %v692_v22 = vmax.f32 %v2105_v19, %v688_v21  ;;  %v701_v41 = vmul.f32 1.442695, %v695_v20  ;;  %v968_v21 = vld [vmem:[#allocation5 + $0x10] sm:$0xff] }
 0x1dd   : > { %v696_v23 = vsub.f32 %v2105_v19, %v692_v22  ;;  %1005 = vst.msk [vmem:[#allocation3 + $0x18] sm:$0xff] %vm761_vm9, %v692_v22  ;;  %722 = vperm.xlu1 %1544, %v692_v22  }
 0x1df   : > { %v703_v56 = vmul.f32 1.442695, %v696_v23 }
 0x1e2   : > { %v1554_v26 = vpop.eup %1553 }
 0x1e3   : > { %972 = vperm.xlu1 %1544, %v1554_v26   ;;  %v741_v60 = vmul.f32 %v1554_v26, %v737_v59 }
 0x24c   : > { %v708_v27 = vpop.permute.xlu0 %707 }
 0x24d   : > { %v725_v28 = vsub.f32 %v2077_v45, %v708_v27  ;;  %v1552_v45 = vld [vmem:[%s2025_s19 + $0x18] sm:$0xff]  }
 0x24f   : > { %v729_v29 = vmul.f32 1.442695, %v725_v28 }
 0x250   : > { %v713_v30 = vpop.permute.xlu1 %712 }
 0x251   : > { %1555 = vpow2.f32 %v729_v29  ;;  %v726_v31 = vsub.f32 %v2083_v49, %v713_v30  ;;  %v969_v29 = vld [vmem:[#allocation5 + $0x18] sm:$0xff] }
 0x253   : > { %v731_v32 = vmul.f32 1.442695, %v726_v31 }
 0x254   : > { %v718_v33 = vpop.permute.xlu1 %717 }
 0x255   : > { %1557 = vpow2.f32 %v731_v32  ;;  %v727_v34 = vsub.f32 %v1401_v61, %v718_v33 }
 0x257   : > { %v733_v35 = vmul.f32 1.442695, %v727_v34 }
 0x258   : > { %v723_v36 = vpop.permute.xlu1 %722 }
 0x259   : > { %1559 = vpow2.f32 %v733_v35  ;;  %v728_v37 = vsub.f32 %v1405_v1, %v723_v36 }
 0x25b   : > { %v735_v38 = vmul.f32 1.442695, %v728_v37 }
 0x25d   : > { %1561 = vpow2.f32 %v735_v38 }
 0x25e   : > { %v1556_v39 = vpop.eup %1555  ;;  %1563 = vpow2.f32 %v701_v41  ;;  %v973_v58 = vpop.permute.xlu1 %972 }
 0x25f   : > { %v745_v42 = vsel %vm676_vm8, %v1556_v39, 0.0  ;;  %v766_v43 = vpack.c.bf16 %v1556_v39, %v1556_v39  ;;  %1565 = vpow2.f32 %v699_v50  ;;  %v990_v10 = vmul.f32 %v973_v58, %v966_v5 }
 0x260   : > { %746 = vadd.xlane.f32.xlu1 %v745_v42  ;;  %1567 = vpow2.f32 %v703_v56 }
 0x261   : > { %1331 = vmatmul.mubr.msk.bf16.vlgmr.msra.gmra.mxu0 %vm676_vm8, %v766_v43 }
 0x262   : > { %v1558_v44 = vpop.eup %1557  ;;  %1341 = vmatpush3.bf16.msra.mxu0 %v1551_v40  ;;  %1342 = vmatprep.mubr.msk.bf16.mxu0 %vm1766_vm4, %v1765_v17 }
 0x263   : > { %v748_v46 = vsel %vm676_vm8, %v1558_v44, 0.0  ;;  %v767_v47 = vpack.c.bf16 %v1558_v44, %v1558_v44 }
 0x264   : > { %749 = vadd.xlane.f32.xlu0 %v748_v46 }
 0x265   : > { %1337 = vmatmul.mubr.msk.bf16.vlgmr.msra.gmra.mxu1 %vm676_vm8, %v767_v47 }
 0x266   : > { %v1560_v48 = vpop.eup %1559  ;;  %1347 = vmatpush3.bf16.msra.mxu1 %v1552_v45  ;;  %1348 = vmatprep.mubr.msk.bf16.mxu1 %vm1766_vm4, %v1765_v17 }
 0x267   : > { %v768_v49 = vpack.c.bf16 %v1560_v48, %v1560_v48  ;;  %v751_v55 = vsel %vm676_vm8, %v1560_v48, 0.0 }
 0x269   : > { %1343 = vmatmul.mubr.msk.bf16.vlgmr.msra.gmra.mxu0 %vm676_vm8, %v768_v49 }
 0x26a   : > { %v1562_v51 = vpop.eup %1561 }
 0x26b   : > { %v769_v52 = vpack.c.bf16 %v1562_v51, %v1562_v51  ;;  %v1564_v53 = vpop.eup %1563  ;;  %v754_v57 = vsel %vm676_vm8, %v1562_v51, 0.0 }
 0x26c   : > { %v1566_v54 = vpop.eup %1565  ;;  %v743_v6 = vmul.f32 %v1564_v53, %v739_v4 }
 0x26d   : > { %1349 = vmatmul.mubr.msk.bf16.vlgmr.msra.gmra.mxu1 %vm676_vm8, %v769_v52  ;;  %v1568_v17 = vpop.eup %1567  ;;  %v742_v0 = vmul.f32 %v1566_v54, %v738_v62 }
 0x26e   : > { %v744_v14 = vmul.f32 %v1568_v17, %v740_v8 }
 0x271   : > { %982 = vperm.xlu1 %1544, %v1564_v53  }
 0x27a   : > { %977 = vperm.xlu0 %1543, %v1566_v54  }
 0x295   : > { %752 = vadd.xlane.f32.xlu1 %v751_v55 }
 0x299   : > { %755 = vadd.xlane.f32.xlu1 %v754_v57 }
 0x2aa   : > { %987 = vperm.xlu1 %1544, %v1568_v17  }
 0x2e9   : > { %v747_v61 = vpop.xlane.xlu1 %746 }
 0x2ea   : > { %v757_v63 = vadd.f32 %v747_v61, %v741_v60 }
 0x2ec   : > { %762 = vst.msk [vmem:[#allocation4] sm:$0xff] %vm761_vm9, %v757_v63 }
 0x2ed   : > { %v750_v1 = vpop.xlane.xlu0 %749  ;;  %v983_v3 = vpop.permute.xlu1 %982 }
 0x2ee   : > { %v758_v2 = vadd.f32 %v750_v1, %v742_v0  ;;  %v992_v27 = vmul.f32 %v983_v3, %v968_v21 }
 0x2f0   : > { %763 = vst.msk [vmem:[#allocation4 + $0x8] sm:$0xff] %vm761_vm9, %v758_v2 }
 0x2f5   : > { %v978_v12 = vpop.permute.xlu0 %977 }
 0x2f6   : > { %v991_v20 = vmul.f32 %v978_v12, %v967_v11 }
 0x31e   : > { %v753_v7 = vpop.xlane.xlu1 %752 }
 0x31f   : > { %v759_v9 = vadd.f32 %v753_v7, %v743_v6 }
 0x321   : > { %764 = vst.msk [vmem:[#allocation4 + $0x10] sm:$0xff] %vm761_vm9, %v759_v9  ;;  %v813_v13 = vpop.f32.mrf.mxu0 }
 0x322   : > { %v994_v15 = vadd.f32 %v990_v10, %v813_v13  ;;  %v756_v16 = vpop.xlane.xlu1 %755 }
 0x323   : > { %v760_v18 = vadd.f32 %v756_v16, %v744_v14  ;;  %v1332_v19 = vpop.f32.mrf.mxu0 }
 0x324   : > { %998 = vst.msk [vmem:[#allocation5] sm:$0xff] %vm443_vm3, %v994_v15 }
 0x325   : > { %765 = vst.msk [vmem:[#allocation4 + $0x18] sm:$0xff] %vm761_vm9, %v760_v18  ;;  %v816_v22 = vpop.f32.mrf.mxu0  ;;  %v862_v23 = vpop.f32.mrf.mxu1 }
 0x326   : > { %v995_v24 = vadd.f32 %v991_v20, %v862_v23  ;;  %v988_v28 = vpop.permute.xlu1 %987 }
 0x327   : > { %v1333_v25 = vpop.f32.mrf.mxu0  ;;  %v1338_v26 = vpop.f32.mrf.mxu1  ;;  %v993_v35 = vmul.f32 %v988_v28, %v969_v29 }
 0x328   : > { %999 = vst.msk [vmem:[#allocation5 + $0x8] sm:$0xff] %vm443_vm3, %v995_v24 }
 0x329   : > { %v865_v30 = vpop.f32.mrf.mxu1  ;;  %v911_v31 = vpop.f32.mrf.mxu0 }
 0x32a   : > { %v996_v32 = vadd.f32 %v992_v27, %v911_v31 }
 0x32b   : > { %v1339_v33 = vpop.f32.mrf.mxu1  ;;  %v1344_v34 = vpop.f32.mrf.mxu0 }
 0x32c   : > { %1000 = vst.msk [vmem:[#allocation5 + $0x10] sm:$0xff] %vm443_vm3, %v996_v32 }
 0x32d   : > { %v914_v36 = vpop.f32.mrf.mxu0  ;;  %v960_v37 = vpop.f32.mrf.mxu1 }
 0x32e   : > { %v997_v38 = vadd.f32 %v993_v35, %v960_v37 }
 0x32f   : > { %v1345_v39 = vpop.f32.mrf.mxu0  ;;  %v1350_v40 = vpop.f32.mrf.mxu1  ;;  %1009 = sbr.rel (%p1271_p3) target bundleno = 969 (0x3c9), region = 60 }
 0x330   : > { %1001 = vst.msk [vmem:[#allocation5 + $0x18] sm:$0xff] %vm443_vm3, %v997_v38 }
 0x331   : > { %v963_v41 = vpop.f32.mrf.mxu1 }
 0x333   : > { %v1351_v42 = vpop.f32.mrf.mxu1 }
 0x334   : > { %v1012_v43 = vld [vmem:[#allocation4 + $0x10] sm:$0xff]  ;;  %v1010_v44 = vld [vmem:[#allocation4] sm:$0xff]  ;;  %v1013_v45 = vld [vmem:[#allocation4 + $0x18] sm:$0xff]  ;;  %v1768_v46 = vmov 0   ;;  %vm1050_vm10 = vcmask 519168  }
 0x335   : > { %1570 = vset.pattern.permute.xlu1 %v1768_v46  ;;  %1569 = vset.pattern.permute.xlu0 %v1768_v46  ;;  %1571 = vrcp.f32 %v1012_v43  ;;  %v1011_v47 = vld [vmem:[#allocation4 + $0x8] sm:$0xff]  ;;  %v1020_v52 = vld [vmem:[#allocation5 + $0x10] sm:$0xff]  ;;  %v1018_v53 = vld [vmem:[#allocation5] sm:$0xff] }
 0x336   : > { %1573 = vrcp.f32 %v1010_v44  ;;  %v1019_v59 = vld [vmem:[#allocation5 + $0x8] sm:$0xff] }
 0x337   : > { %1575 = vrcp.f32 %v1013_v45  ;;  %v1021_v17 = vld [vmem:[#allocation5 + $0x18] sm:$0xff] }
 0x338   : > { %1577 = vrcp.f32 %v1011_v47 }
 0x342   : > { %v1572_v48 = vpop.eup %1571 }
 0x343   : > { %v1574_v49 = vpop.eup %1573  ;;  %1034 = vperm.xlu1 %1570, %v1572_v48  }
 0x344   : > { %v1576_v50 = vpop.eup %1575  ;;  %1024 = vperm.xlu0 %1569, %v1574_v49  }
 0x345   : > { %v1578_v51 = vpop.eup %1577 }
 0x347   : > { %1039 = vperm.xlu1 %1570, %v1576_v50  }
 0x348   : > { %1029 = vperm.xlu0 %1569, %v1578_v51  }
 0x3be   : > { %v1035_v54 = vpop.permute.xlu1 %1034 }
 0x3bf   : > { %v1044_v55 = vmul.f32 %v1035_v54, %v1020_v52  ;;  %v1025_v56 = vpop.permute.xlu0 %1024 }
 0x3c0   : > { %v1042_v57 = vmul.f32 %v1025_v56, %v1018_v53 }
 0x3c1   : > { %v1048_v58 = vpack.c.bf16 %v1044_v55, %v1044_v55 }
 0x3c2   : > { %v1046_v60 = vpack.c.bf16 %v1042_v57, %v1042_v57  ;;  %v1040_v61 = vpop.permute.xlu1 %1039 }
 0x3c3   : > { %1053 = vst.msk [vmem:[%s2027_s12 + $0x8] sm:$0xf] %vm1050_vm10, %v1048_v58  ;;  %v1045_v62 = vmul.f32 %v1040_v61, %v1021_v17  ;;  %v1030_v63 = vpop.permute.xlu0 %1029 }
 0x3c4   : > { %1051 = vst.msk [vmem:[%s2027_s12] sm:$0xf] %vm1050_vm10, %v1046_v60  ;;  %v1043_v0 = vmul.f32 %v1030_v63, %v1019_v59 }
 0x3c5   : > { %v1049_v1 = vpack.c.bf16 %v1045_v62, %v1045_v62 }
 0x3c6   : > { %v1047_v2 = vpack.c.bf16 %v1043_v0, %v1043_v0 }
 0x3c7   : > { %1054 = vst.msk [vmem:[%s2027_s12 + $0xc] sm:$0xf] %vm1050_vm10, %v1049_v1 }
 0x3c8   : > { %1052 = vst.msk [vmem:[%s2027_s12 + $0x4] sm:$0xf] %vm1050_vm10, %v1047_v2 }
 0x3c9 PF: > { %s2263_s18 = sld [smem:[#allocation25_spill]]  ;;  %s1073_s6 = sshll.u32 %s2027_s12, 4  ;;  %s2147_s6 = int_to_ptr.vmem [resolvable:$true] %s1073_s6 }
 0x3ca   : > { %s2264_s26 = sld [smem:[#allocation24_spill]]  ;;  %s1056_s28 = scalar_lea.sflag [#allocation8], %s2009_s11 }
 0x3cb   : > { %s2266_s9 = sld [smem:[#allocation33_spill]]  ;;  %s1605_s27 = scalar_lea.vmem %s2147_s6, 256 }
 0x3cc   : > { %p1606_p10 = scmp.ne.s32.totalorder %s2147_s6, %s1605_s27  ;;  %s1769_s17 = smov [#allocation12]  }
 0x3cd   : > { %s1609_s19 = sshll.u32 %s1769_s17, 4  ;;  %s1610_s19 = int_to_ptr.vmem [resolvable:$false] %s1609_s19 }
 0x3ce   : > { %p1607_p13 = pnand %p1606_p10, %p1925_p8  ;;  %s1611_s12 = scalar_lea.vmem %s1610_s19, 512 }
 0x3cf   : > { %s1273_s15 = sshll.u32 %s2263_s18, 4  ;;  %p1612_p4 = scmp.lt.s32.totalorder %s2147_s6, %s1610_s19 }
 0x3d0   : > { %s1070_s4 = sadd.s32 %s2264_s26, %s1273_s15  ;;  %p1608_p0 = pneg %p1607_p13 }
 0x3d1   : > { %s1274_s30 = sshll.u32 %s1070_s4, 6  ;;  %p1613_p2 = scmp.lt.s32.totalorder %s1611_s12, %s1605_s27 }
 0x3d2   : > { %s2152_s5 = scalar_lea.hbm %s2266_s9, %s1274_s30 }
 0x3d3   : > { %p1614_p6 = por %p1613_p2, %p1612_p4 }
 0x3d5   : > { %p1615_p9 = pnand %p1614_p6, %p1608_p0 }
 0x3d7   : > { %1618 = shalt.err (!%p1615_p9)
}
 0x3d8   : > { %s1619_s25 = scalar_lea.hbm %s2152_s5, 256  ;;  %s1623_s20 = scalar_lea.hbm %s2266_s9, 2048 }
 0x3d9   : > { %p1620_p1 = scmp.ne.s32.totalorder %s2152_s5, %s1619_s25  ;;  %p1624_p12 = scmp.lt.s32.totalorder %s2152_s5, %s2266_s9 }
 0x3da   : > { %p1625_p3 = scmp.lt.s32.totalorder %s1623_s20, %s1619_s25 }
 0x3db   : > { %p1621_p7 = pnand %p1620_p1, %p1925_p8 }
 0x3dc   : > { %p1626_p10 = por %p1625_p3, %p1624_p12 }
 0x3dd   : > { %p1622_p11 = pneg %p1621_p7 }
 0x3df   : > { %p1627_p13 = pnand %p1626_p10, %p1622_p11 }
 0x3e1   : > { %1630 = shalt.err (!%p1627_p13)
}
 0x3e2   : > { %s1770_s15 = smov 64   ;;  %s1771_s4 = smov 256  }
 0x3e3   : > { %s1772_s30 = smov 4  }
 0x3e4   : > { %1406 = dma.vmem_to_hbm [thread:$0]  (%p1925_p8), %s2147_s6, 256, %s2152_s5, %s1056_s28, %s1770_s15, %s1771_s4, %s1772_s30  }
 0x3e5 PF: > { %s2267_s3 = sld [smem:[#allocation22_spill]]  ;;  %p1414_p0 = scmp.ge.s32.totalorder %s1745_s24, 2 }
 0x3e7   : > { %p1409_p4 = pnand %p1414_p0, %p1942_p5 }
 0x3e9   : > { %p1410_p2 = pneg %p1409_p4 }
 0x3eb   : > { %s1088_s27 = sand.u32 1, %s2267_s3  }
 0x3ec   : > { %s1089_s17 = scalar_lea.sflag [#allocation8], %s1088_s27 }
 0x3ed   : > { %1692 = dma.done.wait (%p1410_p2), %s1089_s17, 256  }
 0x3ee   : > { %1694 = vsyncadd (%p1410_p2), %s1089_s17, 4294967040  ;;  %s22_s24 = sadd.s32 1, %s1745_s24   ;;  %s2270_s11 = sld [smem:[#allocation31_spill]] }
 0x3ef   : > { %p2182_p6 = scmp.ge.s32.totalorder %s22_s24, 18   ;;  %s2271_s29 = sld [smem:[#allocation23_spill]] }
 0x3f0   : > { %s2272_s17 = sld [smem:[#allocation30_spill]]  ;;  %s2277_s12 = smov %s1701_s13 }
 0x3f1   : > { %s2273_s6 = sld [smem:[#allocation26_spill]]  ;;  %s2278_s13 = smov %s1705_s14 }
 0x3f2   : > { %s2274_s5 = sld [smem:[#allocation27_spill]]  ;;  %s2280_s15 = smov %s1713_s16 }
 0x3f3   : > { %s2275_s28 = sld [smem:[#allocation28_spill]]  ;;  %s2282_s18 = smov %s1733_s21 }
 0x3f4   : > { %s2279_s14 = smov %s2270_s11  ;;  %s2283_s19 = smov %s1737_s22 }
 0x3f5   : > { %s2281_s16 = smov %s2271_s29  ;;  %s2284_s20 = smov %s1741_s23 }
 0x3f6   :  { %21 = sbr.rel (!%p2182_p6) target bundleno = 14 (0xe), region = 127 }
 0x3f7   : > { %s2285_s21 = smov %s2273_s6 }
 0x3f8   : > { %s2286_s22 = smov %s2274_s5 }
 0x3f9   : > { %s2287_s23 = smov %s2275_s28 }
 0x3fb   :  { %1094 = vsyncpa [#allocation7], 1 }
 0x3fc   :  { %1096 = vsyncpa [#allocation7 + $0x1], 1 }
 0x3fd   :  { %1097 = vsyncpa [#allocation10], 1 }
 0x3fe   :  { %1099 = vsyncpa [#allocation10 + $0x1], 1 }
 0x3ff   :  { %1100 = vsyncpa [#allocation8], 1 }
 0x400   :  { %1102 = vsyncpa [#allocation8 + $0x1], 1 }

</bundles_post_ra>
